<compile_context>
chip_gen: v5e
topology: v5e:2x2
jax: 0.10.0
libtpu: 0.0.40
codegen_flags: <defaults>
</compile_context>

<pallas_src>
import functools

import jax
import jax.numpy as jnp
from jax.experimental import pallas as pl
from jax.experimental.pallas import tpu as pltpu


def _policy_kernel(x_ref, w_ref, b_ref, out_ref, *, inv_hw):
    # x_ref: (TN, C, HW)   w_ref: (C, 2B)   b_ref: (1, 2B)   out_ref: (TN, 2B)
    # Global average pool: f32-accumulated sum over the lane axis; scale the
    # small (TN, C) intermediate instead of casting the whole x tile to f32.
    x_sum = jnp.sum(x_ref[...], axis=-1, dtype=jnp.float32)          # (TN, C)
    x_avg = x_sum * inv_hw
    out = jnp.dot(x_avg, w_ref[...].astype(jnp.float32),
                  preferred_element_type=jnp.float32)                # (TN, 2B)
    out = out + b_ref[...].astype(jnp.float32)
    out_ref[...] = out.astype(out_ref.dtype)


def _choose_tile_n(n, c, hw, itemsize, target_bytes=6 << 20):
    """Largest batch tile whose double-buffered x slab stays under ~target."""
    per_row = c * hw * itemsize
    tn = max(1, target_bytes // (2 * per_row))
    tn = min(int(tn), max(int(n), 1))
    # Round up to a sublane multiple so the (TN, 2B) output block tiles cleanly.
    return -(-tn // 8) * 8


def policy_generator_forward(x, close_w, open_w, close_b, open_b):
    """x: (N, C, H, W); conv weights: (B, C, 1, 1); biases: (B,). Returns (N, B, 2, 1)."""
    N, C, H, W = x.shape
    B = close_w.shape[0]
    HW = H * W

    x_flat = x.reshape(N, C, HW)

    # Fuse both heads into one pre-transposed weight / bias.
    w_cat = jnp.concatenate(
        [close_w.reshape(B, C).T, open_w.reshape(B, C).T], axis=1)     # (C, 2B)
    b_cat = jnp.concatenate([close_b, open_b]).reshape(1, 2 * B)       # (1, 2B)

    itemsize = jnp.dtype(x.dtype).itemsize
    tn = _choose_tile_n(N, C, HW, itemsize)
    n_pad = pl.cdiv(N, tn) * tn
    if n_pad != N:
        x_flat = jnp.pad(x_flat, ((0, n_pad - N), (0, 0), (0, 0)))

    grid = (n_pad // tn,)
    w_bytes = w_cat.size * jnp.dtype(w_cat.dtype).itemsize
    b_bytes = b_cat.size * jnp.dtype(b_cat.dtype).itemsize
    cost = pl.CostEstimate(
        flops=2 * n_pad * C * HW + 2 * n_pad * C * 2 * B,
        transcendentals=0,
        bytes_accessed=n_pad * C * HW * itemsize + w_bytes + b_bytes
        + n_pad * 2 * B * itemsize,
    )

    out = pl.pallas_call(
        functools.partial(_policy_kernel, inv_hw=1.0 / float(HW)),
        out_shape=jax.ShapeDtypeStruct((n_pad, 2 * B), x.dtype),
        grid=grid,
        in_specs=[
            pl.BlockSpec((tn, C, HW), lambda i: (i, 0, 0)),   # pipelined over N
            pl.BlockSpec((C, 2 * B), lambda i: (0, 0)),       # resident weights
            pl.BlockSpec((1, 2 * B), lambda i: (0, 0)),       # resident bias
        ],
        out_specs=pl.BlockSpec((tn, 2 * B), lambda i: (i, 0)),
        compiler_params=pltpu.CompilerParams(
            dimension_semantics=("parallel",),
        ),
        cost_estimate=cost,
    )(x_flat, w_cat, b_cat)

    out = out[:N]                          # (N, 2B): [:, :B] = close, [:, B:] = open
    # torch.cat([close, open], dim=2) on (N, B, 1, 1) tensors -> (N, B, 2, 1)
    policy = jnp.stack([out[:, :B], out[:, B:]], axis=2)[..., None]
    return policy


def _reference_forward(x, close_w, open_w, close_b, open_b):
    """Pure-JAX reference mirroring the PyTorch module."""
    N, C, H, W = x.shape
    B = close_w.shape[0]
    x_avg = jnp.mean(x, axis=(2, 3))                         # (N, C)
    close = x_avg @ close_w.reshape(B, C).T + close_b        # (N, B)
    open_ = x_avg @ open_w.reshape(B, C).T + open_b          # (N, B)
    return jnp.stack([close, open_], axis=2)[..., None]      # (N, B, 2, 1)


if __name__ == "__main__":
    key = jax.random.PRNGKey(0)
    N, C, H, W = 2, 64, 16, 16        # batch, in_channel, spatial
    num_blocks = 8

    kx, kb1, kb2 = jax.random.split(key, 3)
    x = jax.random.normal(kx, (N, C, H, W), dtype=jnp.float32)

    # nn.init.constant_(weight, 0.5); biases use deterministic uniform init
    # (matching PyTorch's default Conv2d bias range U(-1/sqrt(fan_in), 1/sqrt(fan_in))).
    close_w = jnp.full((num_blocks, C, 1, 1), 0.5, dtype=jnp.float32)
    open_w = jnp.full((num_blocks, C, 1, 1), 0.5, dtype=jnp.float32)
    bound = 1.0 / (C ** 0.5)
    close_b = jax.random.uniform(kb1, (num_blocks,), minval=-bound, maxval=bound,
                                 dtype=jnp.float32)
    open_b = jax.random.uniform(kb2, (num_blocks,), minval=-bound, maxval=bound,
                                dtype=jnp.float32)

    policy = policy_generator_forward(x, close_w, open_w, close_b, open_b)
    policy = jax.block_until_ready(policy)

    assert policy.shape == (N, num_blocks, 2, 1), policy.shape

    ref = _reference_forward(x, close_w, open_w, close_b, open_b)
    assert jnp.allclose(policy, ref, atol=1e-5, rtol=1e-5), "mismatch vs reference"

    print("KERNEL_OK")
</pallas_src>

<mosaic_0001>
module attributes {stable_mosaic.version = 11 : i64} {
  func.func @_policy_kernel(%arg0: i32, %arg1: memref<8x64x256xf32, #tpu.memory_space<vmem>>, %arg2: memref<64x16xf32, #tpu.memory_space<vmem>>, %arg3: memref<1x16xf32, #tpu.memory_space<vmem>>, %arg4: memref<8x16xf32, #tpu.memory_space<vmem>>) attributes {dimension_semantics = [#tpu.dimension_semantics<parallel>], iteration_bounds = array<i64: 1>, scalar_prefetch = 0 : i64, scratch_operands = 0 : i64, tpu.core_type = #tpu.core_type<tc>, window_params = [{transform_indices = @transform_0, window_bounds = array<i64: 8, 64, 256>}, {pipeline_mode = #tpu.pipeline_mode<synchronous>, transform_indices = @transform_1, window_bounds = array<i64: 64, 16>}, {pipeline_mode = #tpu.pipeline_mode<synchronous>, transform_indices = @transform_2, window_bounds = array<i64: 1, 16>}, {transform_indices = @transform_3, window_bounds = array<i64: 8, 16>}]} {
    %c0 = arith.constant 0 : index
    %c0_0 = arith.constant 0 : index
    %c0_1 = arith.constant 0 : index
    %0 = vector.load %arg1[%c0, %c0_0, %c0_1] : memref<8x64x256xf32, #tpu.memory_space<vmem>>, vector<8x64x256xf32>
    %cst = arith.constant dense<0.000000e+00> : vector<8x64xf32>
    %1 = vector.multi_reduction <add>, %0, %cst [2] : vector<8x64x256xf32> to vector<8x64xf32>
    %cst_2 = arith.constant 3.906250e-03 : f32
    %2 = vector.broadcast %cst_2 : f32 to vector<8x64xf32>
    %3 = arith.mulf %1, %2 : vector<8x64xf32>
    %c0_3 = arith.constant 0 : index
    %c0_4 = arith.constant 0 : index
    %4 = vector.load %arg2[%c0_3, %c0_4] : memref<64x16xf32, #tpu.memory_space<vmem>>, vector<64x16xf32>
    %cst_5 = arith.constant dense<0.000000e+00> : vector<8x16xf32>
    %5 = tpu.matmul %3, %4, %cst_5 {dimension_numbers = #tpu.dot_dimension_numbers<[1], [0], [0], [1], [0, 0, 1, 1], [], []>} : vector<8x64xf32>, vector<64x16xf32>, vector<8x16xf32> -> vector<8x16xf32>
    %c0_6 = arith.constant 0 : index
    %c0_7 = arith.constant 0 : index
    %6 = vector.load %arg3[%c0_6, %c0_7] : memref<1x16xf32, #tpu.memory_space<vmem>>, vector<1x16xf32>
    %7 = vector.broadcast %6 : vector<1x16xf32> to vector<8x16xf32>
    %8 = arith.addf %5, %7 : vector<8x16xf32>
    %c0_8 = arith.constant 0 : index
    %c0_9 = arith.constant 0 : index
    %9 = vector.load %arg4[%c0_8, %c0_9] : memref<8x16xf32, #tpu.memory_space<vmem>>, vector<8x16xf32>
    tpu.vector_store %arg4[%c0_8, %c0_9], %8 {strides = array<i32>} : memref<8x16xf32, #tpu.memory_space<vmem>>, vector<8x16xf32>,
    return
  }
  func.func @transform_0(%arg0: i32) -> (i32, i32, i32) {
    %c0_i32 = arith.constant 0 : i32
    %c0_i32_0 = arith.constant 0 : i32
    %c0_i32_1 = arith.constant 0 : i32
    return %arg0, %c0_i32, %c0_i32_0 : i32, i32, i32
  }
  func.func @transform_1(%arg0: i32) -> (i32, i32) {
    %c0_i32 = arith.constant 0 : i32
    %c0_i32_0 = arith.constant 0 : i32
    %c0_i32_1 = arith.constant 0 : i32
    return %c0_i32, %c0_i32_0 : i32, i32
  }
  func.func @transform_2(%arg0: i32) -> (i32, i32) {
    %c0_i32 = arith.constant 0 : i32
    %c0_i32_0 = arith.constant 0 : i32
    %c0_i32_1 = arith.constant 0 : i32
    return %c0_i32, %c0_i32_0 : i32, i32
  }
  func.func @transform_3(%arg0: i32) -> (i32, i32) {
    %c0_i32 = arith.constant 0 : i32
    %c0_i32_0 = arith.constant 0 : i32
    return %arg0, %c0_i32 : i32, i32
  }
}

</mosaic_0001>

<bundles_post_ra>
// kernel: tpu_custom_call.1
= control target key start
LH: loop header
LB: loop body
LE: loop exit
PB: predicated region body
PF: predicated region fallthrough
CT: control target
= control target key end

     0   :  { %8 = vsyncpa [#allocation3], 0  ;;  %s965_s0 = inlined_call_operand.hbm [shape: f32[8,64,256], index: 0, kind: input, shape index: {}]   ;;  %s966_s1 = inlined_call_operand.vmem [shape: f32[64,16], index: 1, kind: input, shape index: {}]   ;;  %s967_s2 = inlined_call_operand.vmem [shape: f32[1,16], index: 2, kind: input, shape index: {}]   ;;  %s968_s3 = inlined_call_operand.hbm [shape: f32[8,16], index: 3, kind: output, shape index: {}]  }
   0x1   :  { %9 = vsyncpa [#allocation4], 0  ;;  %s14_s14 = sshll.u32 %s965_s0, 4  ;;  %s741_s15 = smov [#allocation2]   ;;  %s15_s14 = int_to_ptr.hbm [resolvable:$true] %s14_s14 }
   0x2   :  { %s16_s16 = sshll.u32 %s741_s15, 4  ;;  %s742_s17 = smov 256   ;;  %s17_s16 = int_to_ptr.vmem [resolvable:$true] %s16_s16 }
   0x3   :  { %s743_s18 = smov 16  }
   0x4   :  { %22 = dma.hbm_to_vmem [thread:$0]  %s15_s14, 16384, %s17_s16, [#allocation3], %s742_s17, %s742_s17, %s743_s18  }
   0x5   :  { %737 = dma.done.wait [#allocation3], 16384  }
   0x6   :  { %738 = vsyncadd [#allocation3], 4294950912  ;;  %v47_v0 = vld [vmem:[#allocation2 + $0x80] sm:$0xff]  ;;  %v48_v1 = vld [vmem:[#allocation2 + $0x88] sm:$0xff]  ;;  %vm496_vm0 = vcmask 130112   ;;  %vm500_vm1 = vcmask 195712  }
   0x7   :  { %v35_v2 = vld [vmem:[#allocation2 + $0x20] sm:$0xff]  ;;  %v183_v3 = vadd.f32 %v48_v1, %v47_v0  ;;  %v36_v4 = vld [vmem:[#allocation2 + $0x28] sm:$0xff]  ;;  %v49_v9 = vld [vmem:[#allocation2 + $0x90] sm:$0xff]  ;;  %vm504_vm2 = vcmask 261312   ;;  %vm508_vm3 = vcmask 326912   ;;  %vm512_vm4 = vcmask 392512  }
   0x8   :  { %v31_v5 = vld [vmem:[#allocation2] sm:$0xff]  ;;  %v32_v6 = vld [vmem:[#allocation2 + $0x8] sm:$0xff]  ;;  %v165_v7 = vadd.f32 %v36_v4, %v35_v2  ;;  %v50_v10 = vld [vmem:[#allocation2 + $0x98] sm:$0xff]  ;;  %vm516_vm5 = vcmask 458112   ;;  %vm520_vm6 = vcmask 523712   ;;  %vm627_vm7 = vcmask 1041409  }
   0x9   :  { %v159_v8 = vadd.f32 %v32_v6, %v31_v5  ;;  %184 = vadd.xlane.f32.xlu1 %v183_v3  ;;  %v51_v11 = vld [vmem:[#allocation2 + $0xa0] sm:$0xff]  ;;  %v52_v12 = vld [vmem:[#allocation2 + $0xa8] sm:$0xff]  ;;  %v33_v13 = vld [vmem:[#allocation2 + $0x10] sm:$0xff]  ;;  %v186_v15 = vadd.f32 %v50_v10, %v49_v9  ;;  %vm629_vm8 = vcmask 1042434   ;;  %vm631_vm9 = vcmask 1043459   ;;  %s744_s8 = smov [#allocation5]  }
   0xa   :  { %166 = vadd.xlane.f32.xlu2 %v165_v7  ;;  %v34_v14 = vld [vmem:[#allocation2 + $0x18] sm:$0xff]  ;;  %v189_v16 = vadd.f32 %v52_v12, %v51_v11  ;;  %v65_v18 = vld [vmem:[#allocation2 + $0x110] sm:$0xff]  ;;  %v63_v22 = vld [vmem:[#allocation2 + $0x100] sm:$0xff]  ;;  %vm633_vm10 = vcmask 1044484   ;;  %vm635_vm11 = vcmask 1045509   ;;  %vm637_vm12 = vcmask 1046534  }
   0xb   :  { %160 = vadd.xlane.f32.xlu0 %v159_v8  ;;  %v162_v17 = vadd.f32 %v34_v14, %v33_v13  ;;  %v66_v19 = vld [vmem:[#allocation2 + $0x118] sm:$0xff]  ;;  %v37_v20 = vld [vmem:[#allocation2 + $0x30] sm:$0xff]  ;;  %v64_v23 = vld [vmem:[#allocation2 + $0x108] sm:$0xff]  ;;  %vm639_vm13 = vcmask 1047559   ;;  %vm641_vm14 = vcmask 523264   ;;  %s671_s9 = sshll.u32 %s744_s8, 4  ;;  %s672_s9 = int_to_ptr.vmem [resolvable:$true] %s671_s9 }
   0xc   :  { %v38_v21 = vld [vmem:[#allocation2 + $0x38] sm:$0xff]  ;;  %v210_v24 = vadd.f32 %v66_v19, %v65_v18  ;;  %v207_v26 = vadd.f32 %v64_v23, %v63_v22  ;;  %v67_v27 = vld [vmem:[#allocation2 + $0x120] sm:$0xff]  ;;  %v68_v28 = vld [vmem:[#allocation2 + $0x128] sm:$0xff]  ;;  %s673_s12 = sshll.u32 %s968_s3, 4  ;;  %vm664_vm15 = vcmask 130048   ;;  %s674_s12 = int_to_ptr.hbm [resolvable:$true] %s673_s12 }
   0xd   :  { %v168_v25 = vadd.f32 %v38_v21, %v37_v20  ;;  %v79_v29 = vld [vmem:[#allocation2 + $0x180] sm:$0xff]  ;;  %v80_v30 = vld [vmem:[#allocation2 + $0x188] sm:$0xff]  ;;  %v53_v31 = vld [vmem:[#allocation2 + $0xb0] sm:$0xff]  ;;  %v213_v33 = vadd.f32 %v68_v28, %v67_v27 }
   0xe   :  { %v54_v32 = vld [vmem:[#allocation2 + $0xb8] sm:$0xff]  ;;  %v231_v34 = vadd.f32 %v80_v30, %v79_v29  ;;  %v39_v36 = vld [vmem:[#allocation2 + $0x40] sm:$0xff]  ;;  %v40_v37 = vld [vmem:[#allocation2 + $0x48] sm:$0xff] }
   0xf   :  { %v192_v35 = vadd.f32 %v54_v32, %v53_v31  ;;  %v55_v38 = vld [vmem:[#allocation2 + $0xc0] sm:$0xff]  ;;  %v56_v39 = vld [vmem:[#allocation2 + $0xc8] sm:$0xff]  ;;  %v81_v40 = vld [vmem:[#allocation2 + $0x190] sm:$0xff]  ;;  %v171_v42 = vadd.f32 %v40_v37, %v39_v36 }
  0x10   :  { %v82_v41 = vld [vmem:[#allocation2 + $0x198] sm:$0xff]  ;;  %v195_v43 = vadd.f32 %v56_v39, %v55_v38  ;;  %v83_v45 = vld [vmem:[#allocation2 + $0x1a0] sm:$0xff]  ;;  %v84_v46 = vld [vmem:[#allocation2 + $0x1a8] sm:$0xff] }
  0x11   :  { %187 = vadd.xlane.f32.xlu1 %v186_v15  ;;  %v234_v44 = vadd.f32 %v82_v41, %v81_v40  ;;  %v95_v47 = vld [vmem:[#allocation2 + $0x200] sm:$0xff]  ;;  %v96_v48 = vld [vmem:[#allocation2 + $0x208] sm:$0xff]  ;;  %v69_v49 = vld [vmem:[#allocation2 + $0x130] sm:$0xff]  ;;  %v237_v51 = vadd.f32 %v84_v46, %v83_v45 }
  0x12   :  { %190 = vadd.xlane.f32.xlu2 %v189_v16  ;;  %v70_v50 = vld [vmem:[#allocation2 + $0x138] sm:$0xff]  ;;  %v255_v52 = vadd.f32 %v96_v48, %v95_v47  ;;  %v41_v54 = vld [vmem:[#allocation2 + $0x50] sm:$0xff]  ;;  %v99_v1 = vld [vmem:[#allocation2 + $0x220] sm:$0xff] }
  0x13   :  { %163 = vadd.xlane.f32.xlu0 %v162_v17  ;;  %v216_v53 = vadd.f32 %v70_v50, %v69_v49  ;;  %v42_v55 = vld [vmem:[#allocation2 + $0x58] sm:$0xff]  ;;  %v57_v56 = vld [vmem:[#allocation2 + $0xd0] sm:$0xff]  ;;  %v100_v2 = vld [vmem:[#allocation2 + $0x228] sm:$0xff] }
  0x14   :  { %v58_v57 = vld [vmem:[#allocation2 + $0xd8] sm:$0xff]  ;;  %v97_v58 = vld [vmem:[#allocation2 + $0x210] sm:$0xff]  ;;  %v174_v60 = vadd.f32 %v42_v55, %v41_v54  ;;  %v71_v3 = vld [vmem:[#allocation2 + $0x140] sm:$0xff]  ;;  %v261_v6 = vadd.f32 %v100_v2, %v99_v1 }
  0x15   :  { %v98_v59 = vld [vmem:[#allocation2 + $0x218] sm:$0xff]  ;;  %v198_v61 = vadd.f32 %v58_v57, %v57_v56  ;;  %v85_v63 = vld [vmem:[#allocation2 + $0x1b0] sm:$0xff]  ;;  %v72_v4 = vld [vmem:[#allocation2 + $0x148] sm:$0xff] }
  0x16   :  { %v258_v62 = vadd.f32 %v98_v59, %v97_v58  ;;  %v86_v0 = vld [vmem:[#allocation2 + $0x1b8] sm:$0xff]  ;;  %v219_v7 = vadd.f32 %v72_v4, %v71_v3  ;;  %v113_v8 = vld [vmem:[#allocation2 + $0x290] sm:$0xff]  ;;  %v43_v10 = vld [vmem:[#allocation2 + $0x60] sm:$0xff] }
  0x17   :  { %v240_v5 = vadd.f32 %v86_v0, %v85_v63  ;;  %v114_v9 = vld [vmem:[#allocation2 + $0x298] sm:$0xff]  ;;  %v44_v11 = vld [vmem:[#allocation2 + $0x68] sm:$0xff]  ;;  %v111_v12 = vld [vmem:[#allocation2 + $0x280] sm:$0xff] }
  0x18   :  { %v112_v13 = vld [vmem:[#allocation2 + $0x288] sm:$0xff]  ;;  %v282_v14 = vadd.f32 %v114_v9, %v113_v8  ;;  %v177_v15 = vadd.f32 %v44_v11, %v43_v10  ;;  %v73_v17 = vld [vmem:[#allocation2 + $0x150] sm:$0xff]  ;;  %v74_v18 = vld [vmem:[#allocation2 + $0x158] sm:$0xff] }
  0x19   :  { %211 = vadd.xlane.f32.xlu1 %v210_v24  ;;  %v279_v16 = vadd.f32 %v112_v13, %v111_v12  ;;  %v87_v19 = vld [vmem:[#allocation2 + $0x1c0] sm:$0xff]  ;;  %v88_v20 = vld [vmem:[#allocation2 + $0x1c8] sm:$0xff]  ;;  %v222_v23 = vadd.f32 %v74_v18, %v73_v17  ;;  %v101_v30 = vld [vmem:[#allocation2 + $0x230] sm:$0xff] }
  0x1a   :  { %169 = vadd.xlane.f32.xlu2 %v168_v25  ;;  %v59_v21 = vld [vmem:[#allocation2 + $0xe0] sm:$0xff]  ;;  %v60_v22 = vld [vmem:[#allocation2 + $0xe8] sm:$0xff]  ;;  %v243_v24 = vadd.f32 %v88_v20, %v87_v19  ;;  %v102_v31 = vld [vmem:[#allocation2 + $0x238] sm:$0xff] }
  0x1b   :  { %208 = vadd.xlane.f32.xlu0 %v207_v26  ;;  %v201_v25 = vadd.f32 %v60_v22, %v59_v21  ;;  %v115_v26 = vld [vmem:[#allocation2 + $0x2a0] sm:$0xff]  ;;  %v116_v27 = vld [vmem:[#allocation2 + $0x2a8] sm:$0xff]  ;;  %v46_v36 = vld [vmem:[#allocation2 + $0x78] sm:$0xff] }
  0x1c   :  { %v127_v28 = vld [vmem:[#allocation2 + $0x300] sm:$0xff]  ;;  %v128_v29 = vld [vmem:[#allocation2 + $0x308] sm:$0xff]  ;;  %v285_v32 = vadd.f32 %v116_v27, %v115_v26  ;;  %v61_v37 = vld [vmem:[#allocation2 + $0xf0] sm:$0xff] }
  0x1d   :  { %v62_v38 = vld [vmem:[#allocation2 + $0xf8] sm:$0xff]  ;;  %v129_v39 = vld [vmem:[#allocation2 + $0x310] sm:$0xff]  ;;  %v103_v46 = vld [vmem:[#allocation2 + $0x240] sm:$0xff] }
  0x1e   :  { %v130_v40 = vld [vmem:[#allocation2 + $0x318] sm:$0xff]  ;;  %v104_v47 = vld [vmem:[#allocation2 + $0x248] sm:$0xff]  ;;  %v75_v48 = vld [vmem:[#allocation2 + $0x160] sm:$0xff] }
  0x1f   :  { %v90_v45 = vld [vmem:[#allocation2 + $0x1d8] sm:$0xff]  ;;  %v76_v49 = vld [vmem:[#allocation2 + $0x168] sm:$0xff]  ;;  %v143_v55 = vld [vmem:[#allocation2 + $0x380] sm:$0xff] }
  0x20   :  { %v132_v54 = vld [vmem:[#allocation2 + $0x328] sm:$0xff]  ;;  %v117_v57 = vld [vmem:[#allocation2 + $0x2b0] sm:$0xff]  ;;  %v118_v58 = vld [vmem:[#allocation2 + $0x2b8] sm:$0xff] }
  0x21   :  { %214 = vadd.xlane.f32.xlu1 %v213_v33  ;;  %v303_v33 = vadd.f32 %v128_v29, %v127_v28  ;;  %v144_v56 = vld [vmem:[#allocation2 + $0x388] sm:$0xff]  ;;  %v78_v63 = vld [vmem:[#allocation2 + $0x178] sm:$0xff]  ;;  %v91_v0 = vld [vmem:[#allocation2 + $0x1e0] sm:$0xff] }
  0x22   :  { %232 = vadd.xlane.f32.xlu2 %v231_v34  ;;  %v264_v34 = vadd.f32 %v102_v31, %v101_v30  ;;  %v92_v1 = vld [vmem:[#allocation2 + $0x1e8] sm:$0xff]  ;;  %v145_v2 = vld [vmem:[#allocation2 + $0x390] sm:$0xff]  ;;  %v146_v3 = vld [vmem:[#allocation2 + $0x398] sm:$0xff] }
  0x23   :  { %193 = vadd.xlane.f32.xlu0 %v192_v35  ;;  %v45_v35 = vld [vmem:[#allocation2 + $0x70] sm:$0xff]  ;;  %v120_v8 = vld [vmem:[#allocation2 + $0x2c8] sm:$0xff]  ;;  %v134_v10 = vld [vmem:[#allocation2 + $0x338] sm:$0xff] }
  0x24   :  { %v180_v41 = vadd.f32 %v46_v36, %v45_v35  ;;  %v133_v9 = vld [vmem:[#allocation2 + $0x330] sm:$0xff]  ;;  %v106_v12 = vld [vmem:[#allocation2 + $0x258] sm:$0xff]  ;;  %v108_v26 = vld [vmem:[#allocation2 + $0x268] sm:$0xff] }
  0x25   :  { %v105_v11 = vld [vmem:[#allocation2 + $0x250] sm:$0xff]  ;;  %v312_v18 = vadd.f32 %v134_v10, %v133_v9  ;;  %v147_v27 = vld [vmem:[#allocation2 + $0x3a0] sm:$0xff]  ;;  %v148_v28 = vld [vmem:[#allocation2 + $0x3a8] sm:$0xff] }
  0x26   :  { %v270_v19 = vadd.f32 %v106_v12, %v105_v11  ;;  %v93_v22 = vld [vmem:[#allocation2 + $0x1f0] sm:$0xff]  ;;  %v124_v9 = vld [vmem:[#allocation2 + $0x2e8] sm:$0xff]  ;;  %v138_v11 = vld [vmem:[#allocation2 + $0x358] sm:$0xff] }
  0x27   :  { %v137_v10 = vld [vmem:[#allocation2 + $0x350] sm:$0xff] }
  0x28   :  { %v109_v12 = vld [vmem:[#allocation2 + $0x270] sm:$0xff] }
  0x29   :  { %172 = vadd.xlane.f32.xlu1 %v171_v42  ;;  %v204_v42 = vadd.f32 %v62_v38, %v61_v37 }
  0x2a   :  { %196 = vadd.xlane.f32.xlu2 %v195_v43  ;;  %v306_v43 = vadd.f32 %v130_v40, %v129_v39 }
  0x2b   :  { %235 = vadd.xlane.f32.xlu0 %v234_v44  ;;  %v89_v44 = vld [vmem:[#allocation2 + $0x1d0] sm:$0xff] }
  0x2c   :  { %v246_v50 = vadd.f32 %v90_v45, %v89_v44 }
  0x31   :  { %238 = vadd.xlane.f32.xlu1 %v237_v51  ;;  %v267_v51 = vadd.f32 %v104_v47, %v103_v46 }
  0x32   :  { %256 = vadd.xlane.f32.xlu2 %v255_v52  ;;  %v225_v52 = vadd.f32 %v76_v49, %v75_v48 }
  0x33   :  { %217 = vadd.xlane.f32.xlu0 %v216_v53  ;;  %v131_v53 = vld [vmem:[#allocation2 + $0x320] sm:$0xff] }
  0x34   :  { %v309_v59 = vadd.f32 %v132_v54, %v131_v53  ;;  %v150_v54 = vld [vmem:[#allocation2 + $0x3b8] sm:$0xff] }
  0x39   :  { %175 = vadd.xlane.f32.xlu1 %v174_v60  ;;  %v327_v60 = vadd.f32 %v144_v56, %v143_v55  ;;  %v121_v55 = vld [vmem:[#allocation2 + $0x2d0] sm:$0xff]  ;;  %v122_v56 = vld [vmem:[#allocation2 + $0x2d8] sm:$0xff] }
  0x3a   :  { %199 = vadd.xlane.f32.xlu2 %v198_v61  ;;  %v288_v61 = vadd.f32 %v118_v58, %v117_v57 }
  0x3b   :  { %259 = vadd.xlane.f32.xlu0 %v258_v62  ;;  %v77_v62 = vld [vmem:[#allocation2 + $0x170] sm:$0xff] }
  0x3c   :  { %v228_v4 = vadd.f32 %v78_v63, %v77_v62 }
  0x41   :  { %241 = vadd.xlane.f32.xlu1 %v240_v5  ;;  %v249_v5 = vadd.f32 %v92_v1, %v91_v0 }
  0x42   :  { %262 = vadd.xlane.f32.xlu2 %v261_v6  ;;  %v330_v6 = vadd.f32 %v146_v3, %v145_v2  ;;  %v294_v2 = vadd.f32 %v122_v56, %v121_v55  ;;  %v153_v55 = vld [vmem:[#allocation2 + $0x3d0] sm:$0xff]  ;;  %v154_v56 = vld [vmem:[#allocation2 + $0x3d8] sm:$0xff] }
  0x43   :  { %220 = vadd.xlane.f32.xlu0 %v219_v7  ;;  %v119_v7 = vld [vmem:[#allocation2 + $0x2c0] sm:$0xff] }
  0x44   :  { %v291_v17 = vadd.f32 %v120_v8, %v119_v7  ;;  %v123_v8 = vld [vmem:[#allocation2 + $0x2e0] sm:$0xff] }
  0x49   :  { %283 = vadd.xlane.f32.xlu1 %v282_v14  ;;  %v491_v14 = vlaneseq }
  0x4a   :  { %178 = vadd.xlane.f32.xlu2 %v177_v15 }
  0x4b   :  { %280 = vadd.xlane.f32.xlu0 %v279_v16  ;;  %v768_v20 = vand.u32 127, %v491_v14 }
  0x4d   :  { %v774_v29 = vadd.s32 4294967280, %v768_v20  ;;  %v787_v58 = vadd.s32 4294967272, %v768_v20 }
  0x51   :  { %223 = vadd.xlane.f32.xlu1 %v222_v23  ;;  %v94_v23 = vld [vmem:[#allocation2 + $0x1f8] sm:$0xff] }
  0x52   :  { %244 = vadd.xlane.f32.xlu2 %v243_v24  ;;  %v107_v24 = vld [vmem:[#allocation2 + $0x260] sm:$0xff]  ;;  %v252_v37 = vadd.f32 %v94_v23, %v93_v22 }
  0x53   :  { %202 = vadd.xlane.f32.xlu0 %v201_v25  ;;  %v771_v25 = vadd.s32 4294967288, %v768_v20  ;;  %v273_v40 = vadd.f32 %v108_v26, %v107_v24 }
  0x59   :  { %286 = vadd.xlane.f32.xlu1 %v285_v32 }
  0x5a   :  { %304 = vadd.xlane.f32.xlu2 %v303_v33 }
  0x5b   :  { %265 = vadd.xlane.f32.xlu0 %v264_v34 }
  0x61   :  { %181 = vadd.xlane.f32.xlu1 %v180_v41  ;;  %v333_v41 = vadd.f32 %v148_v28, %v147_v27  ;;  %v125_v27 = vld [vmem:[#allocation2 + $0x2f0] sm:$0xff] }
  0x62   :  { %205 = vadd.xlane.f32.xlu2 %v204_v42 }
  0x63   :  { %307 = vadd.xlane.f32.xlu0 %v306_v43 }
  0x69   :  { %247 = vadd.xlane.f32.xlu1 %v246_v50  ;;  %v135_v50 = vld [vmem:[#allocation2 + $0x340] sm:$0xff] }
  0x6a   :  { %268 = vadd.xlane.f32.xlu2 %v267_v51  ;;  %v136_v51 = vld [vmem:[#allocation2 + $0x348] sm:$0xff] }
  0x6b   :  { %226 = vadd.xlane.f32.xlu0 %v225_v52  ;;  %v149_v52 = vld [vmem:[#allocation2 + $0x3b0] sm:$0xff]  ;;  %v315_v62 = vadd.f32 %v136_v51, %v135_v50 }
  0x6c   :  { %v336_v1 = vadd.f32 %v150_v54, %v149_v52  ;;  %v142_v54 = vld [vmem:[#allocation2 + $0x378] sm:$0xff] }
  0x71   :  { %310 = vadd.xlane.f32.xlu1 %v309_v59 }
  0x72   :  { %328 = vadd.xlane.f32.xlu2 %v327_v60 }
  0x73   :  { %289 = vadd.xlane.f32.xlu0 %v288_v61 }
  0x79   :  { %229 = vadd.xlane.f32.xlu1 %v228_v4 }
  0x7a   :  { %250 = vadd.xlane.f32.xlu2 %v249_v5 }
  0x7b   :  { %331 = vadd.xlane.f32.xlu0 %v330_v6 }
  0x7c   :  { %v185_v13 = vpop.xlane.xlu1 %184 }
  0x7d   :  { %v167_v15 = vpop.xlane.xlu2 %166  ;;  %v359_v21 = vmul.f32 0.00390625, %v185_v13  ;;  %v110_v13 = vld [vmem:[#allocation2 + $0x278] sm:$0xff] }
  0x7e   :  { %v161_v16 = vpop.xlane.xlu0 %160  ;;  %v353_v33 = vmul.f32 0.00390625, %v167_v15  ;;  %v276_v22 = vadd.f32 %v110_v13, %v109_v12 }
  0x7f   :  { %v351_v30 = vmul.f32 0.00390625, %v161_v16  ;;  %v522_v32 = vperm.slane %v359_v21, %v768_v20  ;;  %v318_v21 = vadd.f32 %v138_v11, %v137_v10  ;;  %v157_v10 = vld [vmem:[#allocation2 + $0x3f0] sm:$0xff]  ;;  %v158_v11 = vld [vmem:[#allocation2 + $0x3f8] sm:$0xff] }
  0x80   :  { %v499_v46 = vperm.slane %v353_v33, %v774_v29  ;;  %v140_v33 = vld [vmem:[#allocation2 + $0x368] sm:$0xff] }
  0x81   :  { %292 = vadd.xlane.f32.xlu1 %v291_v17  ;;  %v493_v43 = vperm.slane %v351_v30, %v768_v20 }
  0x82   :  { %313 = vadd.xlane.f32.xlu2 %v312_v18  ;;  %v297_v18 = vadd.f32 %v124_v9, %v123_v8  ;;  %v813_v9 = vadd.s32 4294967256, %v768_v20 }
  0x83   :  { %271 = vadd.xlane.f32.xlu0 %v270_v19 }
  0x84   :  { %v188_v31 = vpop.xlane.xlu1 %187 }
  0x85   :  { %v360_v34 = vmul.f32 0.00390625, %v188_v31  ;;  %v191_v35 = vpop.xlane.xlu2 %190  ;;  %v126_v31 = vld [vmem:[#allocation2 + $0x2f8] sm:$0xff] }
  0x86   :  { %v164_v36 = vpop.xlane.xlu0 %163  ;;  %v361_v38 = vmul.f32 0.00390625, %v191_v35  ;;  %v151_v35 = vld [vmem:[#allocation2 + $0x3c0] sm:$0xff] }
  0x87   :  { %v352_v39 = vmul.f32 0.00390625, %v164_v36  ;;  %v523_v42 = vperm.slane %v360_v34, %v771_v25  ;;  %v799_v34 = vadd.s32 4294967264, %v768_v20  ;;  %v152_v36 = vld [vmem:[#allocation2 + $0x3c8] sm:$0xff] }
  0x88   :  { %v525_v44 = vperm.slane %v361_v38, %v774_v29 }
  0x89   :  { %v495_v45 = vperm.slane %v352_v39, %v771_v25  ;;  %v524_v47 = vsel %vm496_vm0, %v523_v42, %v522_v32  ;;  %253 = vadd.xlane.f32.xlu1 %v252_v37  ;;  %v139_v32 = vld [vmem:[#allocation2 + $0x360] sm:$0xff] }
  0x8a   :  { %v526_v48 = vsel %vm500_vm1, %v525_v44, %v524_v47  ;;  %274 = vadd.xlane.f32.xlu2 %v273_v40  ;;  %v321_v42 = vadd.f32 %v140_v33, %v139_v32 }
  0x8b   :  { %v497_v49 = vsel %vm496_vm0, %v495_v45, %v493_v43  ;;  %334 = vadd.xlane.f32.xlu0 %v333_v41  ;;  %v300_v41 = vadd.f32 %v126_v31, %v125_v27 }
  0x8c   :  { %v501_v53 = vsel %vm500_vm1, %v499_v46, %v497_v49  ;;  %v212_v57 = vpop.xlane.xlu1 %211  ;;  %v339_v46 = vadd.f32 %v152_v36, %v151_v35 }
  0x8d   :  { %v368_v59 = vmul.f32 0.00390625, %v212_v57  ;;  %v170_v60 = vpop.xlane.xlu2 %169  ;;  %v155_v57 = vld [vmem:[#allocation2 + $0x3e0] sm:$0xff] }
  0x8e   :  { %v209_v61 = vpop.xlane.xlu0 %208  ;;  %v354_v63 = vmul.f32 0.00390625, %v170_v60 }
  0x8f   :  { %v367_v0 = vmul.f32 0.00390625, %v209_v61  ;;  %v538_v3 = vperm.slane %v368_v59, %v771_v25  ;;  %v156_v59 = vld [vmem:[#allocation2 + $0x3e8] sm:$0xff] }
  0x90   :  { %v503_v4 = vperm.slane %v354_v63, %v787_v58 }
  0x91   :  { %v537_v5 = vperm.slane %v367_v0, %v768_v20  ;;  %316 = vadd.xlane.f32.xlu1 %v315_v62 }
  0x92   :  { %v505_v6 = vsel %vm504_vm2, %v503_v4, %v501_v53  ;;  %337 = vadd.xlane.f32.xlu2 %v336_v1  ;;  %v141_v53 = vld [vmem:[#allocation2 + $0x370] sm:$0xff] }
  0x93   :  { %v539_v7 = vsel %vm496_vm0, %v538_v3, %v537_v5  ;;  %295 = vadd.xlane.f32.xlu0 %v294_v2  ;;  %v324_v0 = vadd.f32 %v142_v54, %v141_v53  ;;  %v342_v2 = vadd.f32 %v154_v56, %v153_v55  ;;  %v345_v3 = vadd.f32 %v156_v59, %v155_v57 }
  0x94   :  { %v215_v14 = vpop.xlane.xlu1 %214 }
  0x95   :  { %v369_v15 = vmul.f32 0.00390625, %v215_v14  ;;  %v233_v16 = vpop.xlane.xlu2 %232 }
  0x96   :  { %v194_v17 = vpop.xlane.xlu0 %193  ;;  %v375_v28 = vmul.f32 0.00390625, %v233_v16 }
  0x97   :  { %v362_v19 = vmul.f32 0.00390625, %v194_v17  ;;  %v540_v23 = vperm.slane %v369_v15, %v774_v29 }
  0x98   :  { %v552_v43 = vperm.slane %v375_v28, %v768_v20 }
  0x99   :  { %v527_v24 = vperm.slane %v362_v19, %v787_v58  ;;  %v541_v26 = vsel %vm500_vm1, %v540_v23, %v539_v7  ;;  %298 = vadd.xlane.f32.xlu1 %v297_v18  ;;  %v348_v19 = vadd.f32 %v158_v11, %v157_v10 }
  0x9a   :  { %319 = vadd.xlane.f32.xlu2 %v318_v21 }
  0x9b   :  { %v528_v30 = vsel %vm504_vm2, %v527_v24, %v526_v48  ;;  %277 = vadd.xlane.f32.xlu0 %v276_v22 }
  0x9c   :  { %v173_v37 = vpop.xlane.xlu1 %172 }
  0x9d   :  { %v355_v38 = vmul.f32 0.00390625, %v173_v37  ;;  %v197_v39 = vpop.xlane.xlu2 %196 }
  0x9e   :  { %v236_v40 = vpop.xlane.xlu0 %235  ;;  %v363_v44 = vmul.f32 0.00390625, %v197_v39 }
  0x9f   :  { %v376_v45 = vmul.f32 0.00390625, %v236_v40  ;;  %v507_v47 = vperm.slane %v355_v38, %v799_v34 }
  0xa0   :  { %v529_v48 = vperm.slane %v363_v44, %v799_v34 }
  0xa1   :  { %v553_v49 = vperm.slane %v376_v45, %v771_v25  ;;  %v509_v50 = vsel %vm508_vm3, %v507_v47, %v505_v6  ;;  %301 = vadd.xlane.f32.xlu1 %v300_v41 }
  0xa2   :  { %v530_v51 = vsel %vm508_vm3, %v529_v48, %v528_v30  ;;  %322 = vadd.xlane.f32.xlu2 %v321_v42 }
  0xa3   :  { %v554_v52 = vsel %vm496_vm0, %v553_v49, %v552_v43  ;;  %340 = vadd.xlane.f32.xlu0 %v339_v46  ;;  %v829_v43 = vadd.s32 4294967248, %v768_v20 }
  0xa4   :  { %v239_v60 = vpop.xlane.xlu1 %238 }
  0xa5   :  { %v377_v61 = vmul.f32 0.00390625, %v239_v60  ;;  %v257_v62 = vpop.xlane.xlu2 %256 }
  0xa6   :  { %v218_v63 = vpop.xlane.xlu0 %217  ;;  %v383_v7 = vmul.f32 0.00390625, %v257_v62 }
  0xa7   :  { %v370_v1 = vmul.f32 0.00390625, %v218_v63  ;;  %v555_v4 = vperm.slane %v377_v61, %v774_v29 }
  0xa8   :  { %v567_v16 = vperm.slane %v383_v7, %v768_v20 }
  0xa9   :  { %v542_v5 = vperm.slane %v370_v1, %v787_v58  ;;  %v556_v6 = vsel %vm500_vm1, %v555_v4, %v554_v52  ;;  %325 = vadd.xlane.f32.xlu1 %v324_v0 }
  0xaa   :  { %346 = vadd.xlane.f32.xlu2 %v345_v3 }
  0xab   :  { %v543_v8 = vsel %vm504_vm2, %v542_v5, %v541_v26  ;;  %343 = vadd.xlane.f32.xlu0 %v342_v2 }
  0xac   :  { %v176_v12 = vpop.xlane.xlu1 %175 }
  0xad   :  { %v356_v13 = vmul.f32 0.00390625, %v176_v12  ;;  %v200_v14 = vpop.xlane.xlu2 %199 }
  0xae   :  { %v260_v15 = vpop.xlane.xlu0 %259  ;;  %v364_v17 = vmul.f32 0.00390625, %v200_v14  ;;  %v851_v14 = vadd.s32 4294967240, %v768_v20 }
  0xaf   :  { %v384_v18 = vmul.f32 0.00390625, %v260_v15  ;;  %v511_v21 = vperm.slane %v356_v13, %v813_v9 }
  0xb0   :  { %v531_v22 = vperm.slane %v364_v17, %v813_v9 }
  0xb1   :  { %v568_v23 = vperm.slane %v384_v18, %v771_v25  ;;  %v513_v24 = vsel %vm512_vm4, %v511_v21, %v509_v50 }
  0xb2   :  { %v532_v26 = vsel %vm512_vm4, %v531_v22, %v530_v51 }
  0xb3   :  { %v569_v27 = vsel %vm496_vm0, %v568_v23, %v567_v16  ;;  %349 = vadd.xlane.f32.xlu0 %v348_v19 }
  0xb4   :  { %v242_v28 = vpop.xlane.xlu1 %241 }
  0xb5   :  { %v378_v30 = vmul.f32 0.00390625, %v242_v28  ;;  %v263_v31 = vpop.xlane.xlu2 %262 }
  0xb6   :  { %v221_v32 = vpop.xlane.xlu0 %220  ;;  %v385_v33 = vmul.f32 0.00390625, %v263_v31 }
  0xb7   :  { %v371_v35 = vmul.f32 0.00390625, %v221_v32  ;;  %v557_v36 = vperm.slane %v378_v30, %v787_v58 }
  0xb8   :  { %v570_v37 = vperm.slane %v385_v33, %v774_v29 }
  0xb9   :  { %v544_v38 = vperm.slane %v371_v35, %v799_v34  ;;  %v558_v39 = vsel %vm504_vm2, %v557_v36, %v556_v6 }
  0xba   :  { %v571_v40 = vsel %vm500_vm1, %v570_v37, %v569_v27 }
  0xbb   :  { %v545_v41 = vsel %vm508_vm3, %v544_v38, %v543_v8 }
  0xbc   :  { %v284_v42 = vpop.xlane.xlu1 %283 }
  0xbd   :  { %v392_v44 = vmul.f32 0.00390625, %v284_v42  ;;  %v179_v45 = vpop.xlane.xlu2 %178 }
  0xbe   :  { %v281_v46 = vpop.xlane.xlu0 %280  ;;  %v357_v47 = vmul.f32 0.00390625, %v179_v45 }
  0xbf   :  { %v391_v48 = vmul.f32 0.00390625, %v281_v46  ;;  %v583_v49 = vperm.slane %v392_v44, %v771_v25 }
  0xc0   :  { %v515_v50 = vperm.slane %v357_v47, %v829_v43 }
  0xc1   :  { %v582_v51 = vperm.slane %v391_v48, %v768_v20 }
  0xc2   :  { %v517_v52 = vsel %vm516_vm5, %v515_v50, %v513_v24 }
  0xc3   :  { %v584_v53 = vsel %vm496_vm0, %v583_v49, %v582_v51 }
  0xc4   :  { %v224_v54 = vpop.xlane.xlu1 %223 }
  0xc5   :  { %v372_v55 = vmul.f32 0.00390625, %v224_v54  ;;  %v245_v56 = vpop.xlane.xlu2 %244 }
  0xc6   :  { %v203_v57 = vpop.xlane.xlu0 %202  ;;  %v379_v59 = vmul.f32 0.00390625, %v245_v56 }
  0xc7   :  { %v365_v60 = vmul.f32 0.00390625, %v203_v57  ;;  %v546_v61 = vperm.slane %v372_v55, %v813_v9  ;;  %v422_v55 = vld [vmem:[%s966_s1 + $0x38] sm:$0xff] }
  0xc8   :  { %v559_v62 = vperm.slane %v379_v59, %v799_v34  ;;  %652 = vmatpush.msra.mxu0 %v422_v55 }
  0xc9   :  { %v533_v63 = vperm.slane %v365_v60, %v829_v43  ;;  %v547_v0 = vsel %vm512_vm4, %v546_v61, %v545_v41 }
  0xca   :  { %v560_v1 = vsel %vm508_vm3, %v559_v62, %v558_v39 }
  0xcb   :  { %v534_v2 = vsel %vm516_vm5, %v533_v63, %v532_v26  ;;  %v421_v63 = vld [vmem:[%s966_s1 + $0x30] sm:$0xff] }
  0xcc   :  { %v287_v3 = vpop.xlane.xlu1 %286  ;;  %653 = vmatpush.msra.mxu0 %v421_v63 }
  0xcd   :  { %v393_v4 = vmul.f32 0.00390625, %v287_v3  ;;  %v305_v5 = vpop.xlane.xlu2 %304 }
  0xce   :  { %v266_v6 = vpop.xlane.xlu0 %265  ;;  %v399_v12 = vmul.f32 0.00390625, %v305_v5 }
  0xcf   :  { %v386_v7 = vmul.f32 0.00390625, %v266_v6  ;;  %v585_v8 = vperm.slane %v393_v4, %v774_v29  ;;  %v420_v4 = vld [vmem:[%s966_s1 + $0x28] sm:$0xff] }
  0xd0   :  { %v597_v19 = vperm.slane %v399_v12, %v768_v20  ;;  %654 = vmatpush.msra.mxu0 %v420_v4 }
  0xd1   :  { %v572_v10 = vperm.slane %v386_v7, %v787_v58  ;;  %v845_v11 = vsel %vm500_vm1, %v585_v8, %v584_v53  ;;  %v419_v7 = vld [vmem:[%s966_s1 + $0x20] sm:$0xff] }
  0xd2   :  { %655 = vmatpush.msra.mxu0 %v419_v7 }
  0xd3   :  { %v848_v13 = vsel %vm504_vm2, %v572_v10, %v571_v40 }
  0xd4   :  { %v182_v15 = vpop.xlane.xlu1 %181 }
  0xd5   :  { %v358_v16 = vmul.f32 0.00390625, %v182_v15  ;;  %v206_v17 = vpop.xlane.xlu2 %205  ;;  %v417_v15 = vld [vmem:[%s966_s1 + $0x10] sm:$0xff] }
  0xd6   :  { %v308_v18 = vpop.xlane.xlu0 %307  ;;  %v366_v21 = vmul.f32 0.00390625, %v206_v17 }
  0xd7   :  { %v400_v22 = vmul.f32 0.00390625, %v308_v18  ;;  %v519_v23 = vperm.slane %v358_v16, %v851_v14  ;;  %v416_v18 = vld [vmem:[%s966_s1 + $0x8] sm:$0xff] }
  0xd8   :  { %v535_v24 = vperm.slane %v366_v21, %v851_v14 }
  0xd9   :  { %v598_v26 = vperm.slane %v400_v22, %v771_v25  ;;  %v521_v27 = vsel %vm520_vm6, %v519_v23, %v517_v52 }
  0xda   :  { %v536_v28 = vsel %vm520_vm6, %v535_v24, %v534_v2 }
  0xdb   :  { %v860_v30 = vsel %vm496_vm0, %v598_v26, %v597_v19  ;;  %v628_v31 = vsel %vm627_vm7, %v536_v28, %v521_v27  ;;  %v415_v19 = vld [vmem:[%s966_s1] sm:$0xff] }
  0xdc   :  { %v248_v32 = vpop.xlane.xlu1 %247 }
  0xdd   :  { %v269_v33 = vpop.xlane.xlu2 %268  ;;  %v380_v53 = vmul.f32 0.00390625, %v248_v32 }
  0xde   :  { %v227_v35 = vpop.xlane.xlu0 %226  ;;  %v387_v16 = vmul.f32 0.00390625, %v269_v33 }
  0xdf   :  { %v373_v36 = vmul.f32 0.00390625, %v227_v35  ;;  %v561_v56 = vperm.slane %v380_v53, %v813_v9 }
  0xe0   :  { %v574_v22 = vperm.slane %v387_v16, %v799_v34 }
  0xe1   :  { %v548_v37 = vperm.slane %v373_v36, %v829_v43 }
  0xe2   :  { %v575_v35 = vsel %vm508_vm3, %v574_v22, %v848_v13 }
  0xe3   :  { %v549_v38 = vsel %vm516_vm5, %v548_v37, %v547_v0  ;;  %v562_v0 = vsel %vm512_vm4, %v561_v56, %v560_v1  ;;  %v418_v1 = vld [vmem:[%s966_s1 + $0x18] sm:$0xff] }
  0xe4   :  { %v864_v39 = vpop.xlane.xlu1 %310  ;;  %656 = vmatpush.msra.mxu0 %v418_v1 }
  0xe5   :  { %v866_v40 = vpop.xlane.xlu2 %328  ;;  %v401_v13 = vmul.f32 0.00390625, %v864_v39 }
  0xe6   :  { %v290_v41 = vpop.xlane.xlu0 %289  ;;  %657 = vmatpush.msra.mxu0 %v417_v15  ;;  %v407_v4 = vmul.f32 0.00390625, %v866_v40 }
  0xe7   :  { %v394_v26 = vmul.f32 0.00390625, %v290_v41  ;;  %v600_v39 = vperm.slane %v401_v13, %v774_v29 }
  0xe8   :  { %658 = vmatpush.msra.mxu0 %v416_v18 }
  0xea   :  { %659 = vmatpush.msra.mxu0 %v415_v19 }
  0xec   :  { %v230_v42 = vpop.xlane.xlu1 %229 }
  0xed   :  { %v374_v44 = vmul.f32 0.00390625, %v230_v42  ;;  %v251_v45 = vpop.xlane.xlu2 %250 }
  0xee   :  { %v868_v46 = vpop.xlane.xlu0 %331  ;;  %v381_v54 = vmul.f32 0.00390625, %v251_v45 }
  0xef   :  { %v550_v47 = vperm.slane %v374_v44, %v851_v14  ;;  %v587_v44 = vperm.slane %v394_v26, %v787_v58 }
  0xf0   :  { %v563_v57 = vperm.slane %v381_v54, %v829_v43 }
  0xf1   :  { %v551_v48 = vsel %vm520_vm6, %v550_v47, %v549_v38  ;;  %v588_v53 = vsel %vm504_vm2, %v587_v44, %v845_v11 }
  0xf2   :  { %v630_v49 = vsel %vm629_vm8, %v551_v48, %v628_v31  ;;  %v564_v3 = vsel %vm516_vm5, %v563_v57, %v562_v0 }
  0xf4   :  { %v293_v50 = vpop.xlane.xlu1 %292 }
  0xf5   :  { %v872_v51 = vpop.xlane.xlu2 %313  ;;  %v395_v32 = vmul.f32 0.00390625, %v293_v50 }
  0xf6   :  { %v272_v52 = vpop.xlane.xlu0 %271  ;;  %v402_v54 = vmul.f32 0.00390625, %v872_v51 }
  0xf7   :  { %v388_v17 = vmul.f32 0.00390625, %v272_v52  ;;  %v589_v45 = vperm.slane %v395_v32, %v799_v34 }
  0xf8   :  { %v602_v11 = vperm.slane %v402_v54, %v787_v58 }
  0xf9   :  { %v576_v23 = vperm.slane %v388_v17, %v813_v9 }
  0xfb   :  { %v577_v37 = vsel %vm512_vm4, %v576_v23, %v575_v35 }
  0xfc   :  { %v254_v59 = vpop.xlane.xlu1 %253 }
  0xfd   :  { %v382_v60 = vmul.f32 0.00390625, %v254_v59  ;;  %v275_v61 = vpop.xlane.xlu2 %274  ;;  %v590_v59 = vsel %vm508_vm3, %v589_v45, %v588_v53 }
  0xfe   :  { %v879_v62 = vpop.xlane.xlu0 %334  ;;  %v389_v21 = vmul.f32 0.00390625, %v275_v61 }
  0xff   :  { %v565_v2 = vperm.slane %v382_v60, %v851_v14  ;;  %v409_v1 = vmul.f32 0.00390625, %v879_v62 }
 0x100   :  { %v578_v27 = vperm.slane %v389_v21, %v829_v43 }
 0x101   :  { %v566_v5 = vsel %vm520_vm6, %v565_v2, %v564_v3  ;;  %v615_v26 = vperm.slane %v409_v1, %v774_v29 }
 0x102   :  { %v632_v6 = vsel %vm631_vm9, %v566_v5, %v630_v49  ;;  %v579_v41 = vsel %vm516_vm5, %v578_v27, %v577_v37  ;;  %v408_v5 = vmul.f32 0.00390625, %v868_v46  ;;  %v612_v46 = vperm.slane %v407_v4, %v768_v20 }
 0x104   :  { %v317_v8 = vpop.xlane.xlu1 %316  ;;  %v613_v22 = vperm.slane %v408_v5, %v771_v25 }
 0x105   :  { %v338_v10 = vpop.xlane.xlu2 %337  ;;  %v403_v60 = vmul.f32 0.00390625, %v317_v8 }
 0x106   :  { %v296_v12 = vpop.xlane.xlu0 %295  ;;  %v410_v15 = vmul.f32 0.00390625, %v338_v10  ;;  %v614_v32 = vsel %vm496_vm0, %v613_v22, %v612_v46 }
 0x107   :  { %v396_v36 = vmul.f32 0.00390625, %v296_v12  ;;  %v601_v12 = vsel %vm500_vm1, %v600_v39, %v860_v30  ;;  %v616_v29 = vsel %vm500_vm1, %v615_v26, %v614_v32 }
 0x108   :  { %v603_v18 = vsel %vm504_vm2, %v602_v11, %v601_v12  ;;  %v617_v27 = vperm.slane %v410_v15, %v787_v58 }
 0x109   :  { %v591_v48 = vperm.slane %v396_v36, %v813_v9 }
 0x10a   :  { %v618_v36 = vsel %vm504_vm2, %v617_v27, %v616_v29 }
 0x10b   :  { %v592_v61 = vsel %vm512_vm4, %v591_v48, %v590_v59 }
 0x10c   :  { %v299_v24 = vpop.xlane.xlu1 %298 }
 0x10d   :  { %v320_v28 = vpop.xlane.xlu2 %319  ;;  %v397_v38 = vmul.f32 0.00390625, %v299_v24 }
 0x10e   :  { %v278_v31 = vpop.xlane.xlu0 %277  ;;  %v404_v63 = vmul.f32 0.00390625, %v320_v28 }
 0x10f   :  { %v390_v33 = vmul.f32 0.00390625, %v278_v31  ;;  %v593_v50 = vperm.slane %v397_v38, %v829_v43 }
 0x110   :  { %v606_v8 = vperm.slane %v404_v63, %v813_v9 }
 0x111   :  { %v580_v42 = vperm.slane %v390_v33, %v851_v14  ;;  %v594_v2 = vsel %vm516_vm5, %v593_v50, %v592_v61 }
 0x113   :  { %v581_v47 = vsel %vm520_vm6, %v580_v42, %v579_v41 }
 0x114   :  { %v634_v49 = vsel %vm633_vm10, %v581_v47, %v632_v6  ;;  %v302_v52 = vpop.xlane.xlu1 %301  ;;  %v604_v6 = vperm.slane %v403_v60, %v799_v34  ;;  %v688_v47 = vld [vmem:[%s967_s2] ss:$0 sm:$0xff] }
 0x115   :  { %v398_v55 = vmul.f32 0.00390625, %v302_v52  ;;  %v323_v56 = vpop.xlane.xlu2 %322 }
 0x116   :  { %v341_v57 = vpop.xlane.xlu0 %340  ;;  %v405_v3 = vmul.f32 0.00390625, %v323_v56  ;;  %v605_v62 = vsel %vm508_vm3, %v604_v6, %v603_v18 }
 0x117   :  { %v595_v0 = vperm.slane %v398_v55, %v851_v14  ;;  %v411_v19 = vmul.f32 0.00390625, %v341_v57  ;;  %v607_v30 = vsel %vm512_vm4, %v606_v8, %v605_v62 }
 0x118   :  { %v608_v16 = vperm.slane %v405_v3, %v829_v43 }
 0x119   :  { %v596_v51 = vsel %vm520_vm6, %v595_v0, %v594_v2  ;;  %v619_v31 = vperm.slane %v411_v19, %v799_v34 }
 0x11a   :  { %v636_v7 = vsel %vm635_vm11, %v596_v51, %v634_v49  ;;  %v609_v28 = vsel %vm516_vm5, %v608_v16, %v607_v30 }
 0x11b   :  { %v620_v37 = vsel %vm508_vm3, %v619_v31, %v618_v36 }
 0x11c   :  { %v326_v17 = vpop.xlane.xlu1 %325 }
 0x11d   :  { %v406_v40 = vmul.f32 0.00390625, %v326_v17  ;;  %v347_v24 = vpop.xlane.xlu2 %346 }
 0x11e   :  { %v344_v21 = vpop.xlane.xlu0 %343  ;;  %v413_v20 = vmul.f32 0.00390625, %v347_v24 }
 0x11f   :  { %v412_v23 = vmul.f32 0.00390625, %v344_v21  ;;  %v610_v10 = vperm.slane %v406_v40, %v851_v14 }
 0x120   :  { %v623_v58 = vperm.slane %v413_v20, %v829_v43 }
 0x121   :  { %v611_v25 = vsel %vm520_vm6, %v610_v10, %v609_v28  ;;  %v621_v33 = vperm.slane %v412_v23, %v813_v9 }
 0x122   :  { %v638_v35 = vsel %vm637_vm12, %v611_v25, %v636_v7 }
 0x123   :  { %v622_v42 = vsel %vm512_vm4, %v621_v33, %v620_v37 }
 0x124   :  { %v624_v41 = vsel %vm516_vm5, %v623_v58, %v622_v42 }
 0x126   :  { %v350_v38 = vpop.xlane.xlu0 %349 }
 0x127   :  { %v414_v34 = vmul.f32 0.00390625, %v350_v38 }
 0x129   :  { %v625_v44 = vperm.slane %v414_v34, %v851_v14 }
 0x12b   :  { %v626_v9 = vsel %vm520_vm6, %v625_v44, %v624_v41 }
 0x12c   :  { %v640_v45 = vsel %vm639_vm13, %v626_v9, %v638_v35 }
 0x12d   :  { %683 = vmatmul.msk.f32.vlgmr.msra.gmra.mxu0 %vm641_vm14, %v640_v45 }
 0x1aa   :  { %v661_v43 = vpop.f32.mrf.mxu0 }
 0x1ab   :  { %v662_v14 = vadd.f32 %v688_v47, %v661_v43 }
 0x1ad   :  { %665 = vst.msk [vmem:[#allocation5] sm:$0xff] %vm664_vm15, %v662_v14 }
 0x1ae   :  { %676 = dma.vmem_to_hbm [thread:$0]  %s672_s9, 128, %s674_s12, [#allocation4]  }
 0x1af   :  { %739 = dma.done.wait [#allocation4], 128  }
 0x1b0   :  { %740 = vsyncadd [#allocation4], 4294967168 }
 0x1b1   :  { %681 = vsyncpa [#allocation3], 1 }
 0x1b2   :  { %682 = vsyncpa [#allocation4], 1 }

</bundles_post_ra>
